<compile_context>
chip_gen: v7x
topology: tpu7x:2x2x1
jax: 0.10.0
libtpu: 0.0.40
codegen_flags: <defaults>
</compile_context>

<pallas_src>
import math

import jax
import jax.numpy as jnp
from jax.experimental import pallas as pl
from jax.experimental.pallas import tpu as pltpu


_TILE_R = 512     # max rows per grid step (multiple of 8)
_LANES = 1024     # lane-dense last dim (multiple of 128)
_C_IN = 3


def _round_up(a, b):
    return ((a + b - 1) // b) * b


def _channelnet_kernel(w_ref, x_ref, o_ref):
    # w_ref: (3,) f32 in SMEM.
    # x_ref: (3, block_r, LANES) f32 in VMEM (one DMA per grid step).
    # o_ref: (block_r, LANES) f32 in VMEM.
    # Pure VPU weighted channel sum; SMEM scalars broadcast over the tile.
    o_ref[...] = (
        x_ref[0] * w_ref[0]
        + x_ref[1] * w_ref[1]
        + x_ref[2] * w_ref[2]
    )


def channelnet_forward(x, weight):
    """Pallas TPU forward for torch.nn.Linear(3, 1, bias=False).

    x: (..., 3) float32, weight: (1, 3) float32 (PyTorch Linear layout).
    Returns (..., 1) float32.
    """
    lead_shape = x.shape[:-1]
    c_in = x.shape[-1]
    assert c_in == _C_IN, "ChannelNet expects 3 input channels"

    n = math.prod(lead_shape) if lead_shape else 1
    lanes = _LANES

    # Row count of the lane-dense slab.
    r = pl.cdiv(n, lanes)

    # Adaptive blocking: cap block at TILE_R, keep padding waste < 8 rows
    # per block, and use >= 2 grid steps when possible so v7x can shard
    # rows across both TensorCores.
    num_blocks = pl.cdiv(r, _TILE_R)
    if num_blocks == 1 and r >= 16:
        num_blocks = 2
    block_r = _round_up(pl.cdiv(r, num_blocks), 8)
    r_pad = num_blocks * block_r
    n_pad = r_pad * lanes

    # Single fused pre-pass: one read of x, one contiguous (3, r_pad, LANES)
    # operand (no per-channel stride-3 slices / separate slabs).
    x2d = x.reshape(n, c_in).astype(jnp.float32)
    xt = jnp.pad(x2d.T, ((0, 0), (0, n_pad - n)))          # (3, n_pad)
    x_slab = xt.reshape(c_in, r_pad, lanes)                 # (3, r_pad, LANES)

    # Weights as three SMEM scalars.
    w = weight.reshape(c_in).astype(jnp.float32)

    grid = (num_blocks,)
    in_blk = pl.BlockSpec((c_in, block_r, lanes), lambda i: (0, i, 0))
    out_blk = pl.BlockSpec((block_r, lanes), lambda i: (i, 0))

    out = pl.pallas_call(
        _channelnet_kernel,
        out_shape=jax.ShapeDtypeStruct((r_pad, lanes), jnp.float32),
        grid_spec=pltpu.PrefetchScalarGridSpec(
            num_scalar_prefetch=0,
            grid=grid,
            in_specs=[
                pl.BlockSpec(memory_space=pltpu.MemorySpace.SMEM),  # weights
                in_blk,                                             # (3, R, L) slab
            ],
            out_specs=out_blk,
        ),
        compiler_params=pltpu.CompilerParams(
            dimension_semantics=("parallel",),
            vmem_limit_bytes=32 * 1024 * 1024,
        ),
        cost_estimate=pl.CostEstimate(
            flops=5 * n_pad,                         # 3 mul + 2 add per element
            transcendentals=0,
            bytes_accessed=4 * (3 * n_pad + n_pad),  # read (3,R,L), write (R,L)
        ),
    )(w, x_slab)

    return out.reshape(-1)[:n].reshape(*lead_shape, 1)


if __name__ == "__main__":
    key = jax.random.PRNGKey(0)
    kx, kw = jax.random.split(key)

    # Small deterministic input consistent with the forward: (..., 3)
    x = jax.random.normal(kx, (2, 16, 16, 3), dtype=jnp.float32)

    # Deterministic weight init mimicking nn.Linear's uniform(-1/sqrt(3), 1/sqrt(3))
    bound = 1.0 / jnp.sqrt(3.0)
    weight = jax.random.uniform(
        kw, (1, 3), dtype=jnp.float32, minval=-bound, maxval=bound
    )

    out = channelnet_forward(x, weight)
    out = jax.block_until_ready(out)

    # Cross-check against plain JAX reference (same semantics as torch Linear).
    ref = jnp.einsum("...c,oc->...o", x, weight)
    assert out.shape == (2, 16, 16, 1), out.shape
    assert jnp.allclose(out, ref, atol=1e-5), "mismatch vs reference"

    print("KERNEL_OK")
</pallas_src>

<mosaic_0001>
module attributes {stable_mosaic.version = 11 : i64} {
  func.func @_channelnet_kernel(%arg0: i32, %arg1: memref<3xf32, #tpu.memory_space<smem>>, %arg2: memref<3x8x1024xf32, #tpu.memory_space<vmem>>, %arg3: memref<8x1024xf32, #tpu.memory_space<vmem>>) attributes {dimension_semantics = [#tpu.dimension_semantics<parallel>], iteration_bounds = array<i64: 1>, scalar_prefetch = 0 : i64, scratch_operands = 0 : i64, tpu.core_type = #tpu.core_type<tc>, window_params = [{transform_indices = @transform_0, window_bounds = array<i64: 3>}, {transform_indices = @transform_1, window_bounds = array<i64: 3, 8, 1024>}, {transform_indices = @transform_2, window_bounds = array<i64: 8, 1024>}]} {
    %c0 = arith.constant 0 : index
    %c0_0 = arith.constant 0 : index
    %c0_1 = arith.constant 0 : index
    %0 = vector.load %arg2[%c0, %c0_0, %c0_1] : memref<3x8x1024xf32, #tpu.memory_space<vmem>>, vector<1x8x1024xf32>
    %1 = vector.shape_cast %0 : vector<1x8x1024xf32> to vector<8x1024xf32>
    %c0_2 = arith.constant 0 : index
    %2 = memref.load %arg1[%c0_2] : memref<3xf32, #tpu.memory_space<smem>>
    %3 = vector.broadcast %2 : f32 to vector<8x1024xf32>
    %4 = arith.mulf %1, %3 : vector<8x1024xf32>
    %c1 = arith.constant 1 : index
    %c0_3 = arith.constant 0 : index
    %c0_4 = arith.constant 0 : index
    %5 = vector.load %arg2[%c1, %c0_3, %c0_4] : memref<3x8x1024xf32, #tpu.memory_space<vmem>>, vector<1x8x1024xf32>
    %6 = vector.shape_cast %5 : vector<1x8x1024xf32> to vector<8x1024xf32>
    %c1_5 = arith.constant 1 : index
    %7 = memref.load %arg1[%c1_5] : memref<3xf32, #tpu.memory_space<smem>>
    %8 = vector.broadcast %7 : f32 to vector<8x1024xf32>
    %9 = arith.mulf %6, %8 : vector<8x1024xf32>
    %10 = arith.addf %4, %9 : vector<8x1024xf32>
    %c2 = arith.constant 2 : index
    %c0_6 = arith.constant 0 : index
    %c0_7 = arith.constant 0 : index
    %11 = vector.load %arg2[%c2, %c0_6, %c0_7] : memref<3x8x1024xf32, #tpu.memory_space<vmem>>, vector<1x8x1024xf32>
    %12 = vector.shape_cast %11 : vector<1x8x1024xf32> to vector<8x1024xf32>
    %c2_8 = arith.constant 2 : index
    %13 = memref.load %arg1[%c2_8] : memref<3xf32, #tpu.memory_space<smem>>
    %14 = vector.broadcast %13 : f32 to vector<8x1024xf32>
    %15 = arith.mulf %12, %14 : vector<8x1024xf32>
    %16 = arith.addf %10, %15 : vector<8x1024xf32>
    %c0_9 = arith.constant 0 : index
    %c0_10 = arith.constant 0 : index
    %17 = vector.load %arg3[%c0_9, %c0_10] : memref<8x1024xf32, #tpu.memory_space<vmem>>, vector<8x1024xf32>
    tpu.vector_store %arg3[%c0_9, %c0_10], %16 {strides = array<i32>} : memref<8x1024xf32, #tpu.memory_space<vmem>>, vector<8x1024xf32>,
    return
  }
  func.func @transform_0(%arg0: i32) -> i32 {
    %c0_i32 = arith.constant 0 : i32
    %c0_i32_0 = arith.constant 0 : i32
    return %c0_i32 : i32
  }
  func.func @transform_1(%arg0: i32) -> (i32, i32, i32) {
    %c0_i32 = arith.constant 0 : i32
    %c0_i32_0 = arith.constant 0 : i32
    %c0_i32_1 = arith.constant 0 : i32
    return %c0_i32, %arg0, %c0_i32_0 : i32, i32, i32
  }
  func.func @transform_2(%arg0: i32) -> (i32, i32) {
    %c0_i32 = arith.constant 0 : i32
    %c0_i32_0 = arith.constant 0 : i32
    return %arg0, %c0_i32 : i32, i32
  }
}

</mosaic_0001>

<bundles_post_ra>
// kernel: tpu_custom_call.1
= control target key start
LH: loop header
LB: loop body
LE: loop exit
PB: predicated region body
PF: predicated region fallthrough
CT: control target
= control target key end

     0   :  { %7 = vsyncpa [#allocation5], 0  ;;  %s256_s0 = inlined_call_operand.hbm [shape: f32[3], index: 0, kind: input, shape index: {}]   ;;  %s257_s1 = inlined_call_operand.hbm [shape: f32[3,8,1024], index: 1, kind: input, shape index: {}]   ;;  %s258_s2 = inlined_call_operand.hbm [shape: f32[8,1024], index: 2, kind: output, shape index: {}]  }
   0x1   :  { %8 = vsyncpa [#allocation3], 0 }
   0x2   :  { %9 = vsyncpa [#allocation4], 0  ;;  %s140_s11 = scalar_lea.hbm %s256_s0, 16 }
   0x3   :  { %p141_p0 = scmp.ne.s32.totalorder %s256_s0, %s140_s11  ;;  %p144_p1 = scmp.lt.u32.totalorder %s140_s11, %s256_s0 }
   0x5   :  { %p146_p2 = pnand %p144_p1, %p141_p0 }
   0x7   :  { %149 = shalt.err (!%p146_p2)
}
   0x8   :  { %s200_s16 = smov [#allocation2]   ;;  %s201_s19 = smov [#allocation6]  }
   0x9   :  { %17 = dma.hbm_to_smem %s256_s0, 16, %s200_s16, [#allocation5]  }
   0xa   :  { %s23_s20 = sshll.u32 %s201_s19, 4  ;;  %s150_s23 = scalar_lea.hbm %s257_s1, 3072  ;;  %s24_s20 = int_to_ptr.vmem [resolvable:$true] %s23_s20 }
   0xb   :  { %p151_p3 = scmp.ne.s32.totalorder %s257_s1, %s150_s23  ;;  %p154_p4 = scmp.lt.u32.totalorder %s150_s23, %s257_s1 }
   0xd   :  { %p156_p5 = pnand %p154_p4, %p151_p3 }
   0xf   :  { %159 = shalt.err (!%p156_p5)
}
  0x10   :  { %s160_s28 = scalar_lea.vmem %s24_s20, 3072  ;;  %p165_p7 = scmp.lt.s32.totalorder %s24_s20, %s24_s20 }
  0x11   :  { %p161_p6 = scmp.ne.s32.totalorder %s24_s20, %s160_s28  ;;  %p166_p8 = scmp.lt.s32.totalorder %s160_s28, %s160_s28 }
  0x13   :  { %p167_p9 = por %p166_p8, %p165_p7 }
  0x15   :  { %p168_p10 = pnand %p167_p9, %p161_p6 }
  0x17   :  { %171 = shalt.err (!%p168_p10)
}
  0x18   :  { %s202_s0 = smov 1024   ;;  %s203_s29 = smov 64  }
  0x19   :  { %29 = dma.hbm_to_vmem [thread:$0]  %s257_s1, 3072, %s24_s20, [#allocation3], %s202_s0, %s202_s0, %s203_s29  }
  0x1a   :  { %194 = dma.done.wait [#allocation5], 16  }
  0x1b   :  { %195 = vsyncadd [#allocation5], 4294967280 }
  0x1c   :  { %196 = dma.done.wait [#allocation3], 3072  }
  0x1d   :  { %197 = vsyncadd [#allocation3], 4294964224 }
  0x1e   :  { %36 = sfence }
  0x1f   :  { %s45_s4 = sld [smem:[#allocation2]]  ;;  %s133_s5 = sld [smem:[#allocation2 + $0x1]]  ;;  %v37_v0 = vld [vmem:[#allocation6] sm:$0xff]  ;;  %v38_v3 = vld [vmem:[#allocation6 + $0x8] sm:$0xff]  ;;  %v39_v6 = vld [vmem:[#allocation6 + $0x10] sm:$0xff] }
  0x20   :  { %s134_s6 = sld [smem:[#allocation2 + $0x2]]  ;;  %v56_v1 = vld [vmem:[#allocation6 + $0x40] sm:$0xff]  ;;  %v57_v4 = vld [vmem:[#allocation6 + $0x48] sm:$0xff]  ;;  %v58_v9 = vld [vmem:[#allocation6 + $0x50] sm:$0xff]  ;;  %s204_s1 = smov [#allocation7]  }
  0x21   :  { %v83_v2 = vld [vmem:[#allocation6 + $0x80] sm:$0xff]  ;;  %v84_v5 = vld [vmem:[#allocation6 + $0x88] sm:$0xff]  ;;  %v85_v10 = vld [vmem:[#allocation6 + $0x90] sm:$0xff]  ;;  %s123_s7 = sshll.u32 %s204_s1, 4  ;;  %s124_s7 = int_to_ptr.vmem [resolvable:$true] %s123_s7 }
  0x22   :  { %v40_v11 = vld [vmem:[#allocation6 + $0x18] sm:$0xff]  ;;  %v41_v18 = vld [vmem:[#allocation6 + $0x20] sm:$0xff]  ;;  %v42_v29 = vld [vmem:[#allocation6 + $0x28] sm:$0xff]  ;;  %s172_s8 = scalar_lea.vmem %s124_s7, 1024  ;;  %p177_p12 = scmp.lt.s32.totalorder %s124_s7, %s124_s7 }
  0x23   :  { %v59_v16 = vld [vmem:[#allocation6 + $0x58] sm:$0xff]  ;;  %v60_v23 = vld [vmem:[#allocation6 + $0x60] sm:$0xff]  ;;  %v61_v30 = vld [vmem:[#allocation6 + $0x68] sm:$0xff]  ;;  %p173_p11 = scmp.ne.s32.totalorder %s124_s7, %s172_s8  ;;  %p178_p13 = scmp.lt.s32.totalorder %s172_s8, %s172_s8 }
  0x24   :  { %v86_v17 = vld [vmem:[#allocation6 + $0x98] sm:$0xff]  ;;  %v87_v24 = vld [vmem:[#allocation6 + $0xa0] sm:$0xff]  ;;  %v88_v35 = vld [vmem:[#allocation6 + $0xa8] sm:$0xff] }
  0x25   :  { %v46_v7 = vstv %s45_s4  ;;  %v65_v8 = vstv %s133_s5  ;;  %v43_v36 = vld [vmem:[#allocation6 + $0x30] sm:$0xff]  ;;  %v44_v47 = vld [vmem:[#allocation6 + $0x38] sm:$0xff]  ;;  %p179_p0 = por %p178_p13, %p177_p12 }
  0x26   :  { %v47_v12 = vmul.f32 %v46_v7, %v37_v0  ;;  %v66_v13 = vmul.f32 %v65_v8, %v56_v1  ;;  %v92_v14 = vstv %s134_s6  ;;  %v48_v15 = vmul.f32 %v46_v7, %v38_v3  ;;  %v62_v41 = vld [vmem:[#allocation6 + $0x70] sm:$0xff]  ;;  %v63_v48 = vld [vmem:[#allocation6 + $0x78] sm:$0xff] }
  0x27   :  { %v93_v19 = vmul.f32 %v92_v14, %v83_v2  ;;  %v67_v20 = vmul.f32 %v65_v8, %v57_v4  ;;  %v94_v21 = vmul.f32 %v92_v14, %v84_v5  ;;  %v49_v22 = vmul.f32 %v46_v7, %v39_v6  ;;  %v89_v42 = vld [vmem:[#allocation6 + $0xb0] sm:$0xff]  ;;  %v90_v49 = vld [vmem:[#allocation6 + $0xb8] sm:$0xff]  ;;  %p180_p1 = pnand %p179_p0, %p173_p11 }
  0x28   :  { %v74_v25 = vadd.f32 %v66_v13, %v47_v12  ;;  %v68_v26 = vmul.f32 %v65_v8, %v58_v9  ;;  %v95_v27 = vmul.f32 %v92_v14, %v85_v10  ;;  %v50_v28 = vmul.f32 %v46_v7, %v40_v11 }
  0x29   :  { %v75_v31 = vadd.f32 %v67_v20, %v48_v15  ;;  %v69_v32 = vmul.f32 %v65_v8, %v59_v16  ;;  %v96_v33 = vmul.f32 %v92_v14, %v86_v17  ;;  %v51_v34 = vmul.f32 %v46_v7, %v41_v18 }
  0x2a   :  { %v101_v37 = vadd.f32 %v93_v19, %v74_v25  ;;  %v76_v38 = vadd.f32 %v68_v26, %v49_v22  ;;  %v70_v39 = vmul.f32 %v65_v8, %v60_v23  ;;  %v97_v40 = vmul.f32 %v92_v14, %v87_v24 }
  0x2b   :  { %v102_v43 = vadd.f32 %v94_v21, %v75_v31  ;;  %v77_v44 = vadd.f32 %v69_v32, %v50_v28  ;;  %v52_v45 = vmul.f32 %v46_v7, %v42_v29  ;;  %v71_v46 = vmul.f32 %v65_v8, %v61_v30 }
  0x2c   :  { %109 = vst [vmem:[#allocation7] sm:$0xff] %v101_v37  ;;  %v103_v50 = vadd.f32 %v95_v27, %v76_v38  ;;  %v78_v51 = vadd.f32 %v70_v39, %v51_v34  ;;  %v98_v52 = vmul.f32 %v92_v14, %v88_v35  ;;  %v53_v53 = vmul.f32 %v46_v7, %v43_v36 }
  0x2d   :  { %110 = vst [vmem:[#allocation7 + $0x8] sm:$0xff] %v102_v43  ;;  %v104_v54 = vadd.f32 %v96_v33, %v77_v44  ;;  %v79_v55 = vadd.f32 %v71_v46, %v52_v45  ;;  %v72_v56 = vmul.f32 %v65_v8, %v62_v41  ;;  %v99_v57 = vmul.f32 %v92_v14, %v89_v42 }
  0x2e   :  { %111 = vst [vmem:[#allocation7 + $0x10] sm:$0xff] %v103_v50  ;;  %v105_v58 = vadd.f32 %v97_v40, %v78_v51  ;;  %v54_v59 = vmul.f32 %v46_v7, %v44_v47  ;;  %v73_v60 = vmul.f32 %v65_v8, %v63_v48  ;;  %v100_v61 = vmul.f32 %v92_v14, %v90_v49 }
  0x2f   :  { %112 = vst [vmem:[#allocation7 + $0x18] sm:$0xff] %v104_v54  ;;  %v106_v62 = vadd.f32 %v98_v52, %v79_v55  ;;  %v80_v63 = vadd.f32 %v72_v56, %v53_v53 }
  0x30   :  { %113 = vst [vmem:[#allocation7 + $0x20] sm:$0xff] %v105_v58  ;;  %v81_v0 = vadd.f32 %v73_v60, %v54_v59 }
  0x31   :  { %114 = vst [vmem:[#allocation7 + $0x28] sm:$0xff] %v106_v62  ;;  %v107_v1 = vadd.f32 %v99_v57, %v80_v63 }
  0x32   :  { %v108_v2 = vadd.f32 %v100_v61, %v81_v0 }
  0x33   :  { %115 = vst [vmem:[#allocation7 + $0x30] sm:$0xff] %v107_v1 }
  0x34   :  { %116 = vst [vmem:[#allocation7 + $0x38] sm:$0xff] %v108_v2 }
  0x35   :  { %183 = shalt.err (!%p180_p1)
}
  0x36   :  { %s184_s11 = scalar_lea.hbm %s258_s2, 1024 }
  0x37   :  { %p185_p2 = scmp.ne.s32.totalorder %s258_s2, %s184_s11  ;;  %p188_p3 = scmp.lt.u32.totalorder %s184_s11, %s258_s2 }
  0x39   :  { %p190_p4 = pnand %p188_p3, %p185_p2 }
  0x3b   :  { %193 = shalt.err (!%p190_p4)
}
  0x3c   :  { %126 = dma.vmem_to_hbm [thread:$0]  %s124_s7, 1024, %s258_s2, [#allocation4]  }
  0x3d   :  { %198 = dma.done.wait [#allocation4], 1024  }
  0x3e   :  { %199 = vsyncadd [#allocation4], 4294966272 }
  0x3f   :  { %130 = vsyncpa [#allocation3], 1 }
  0x40   :  { %131 = vsyncpa [#allocation4], 1 }
  0x41   :  { %132 = vsyncpa [#allocation5], 1 }

</bundles_post_ra>
